<compile_context>
chip_gen: v5e
topology: v5e:2x2
jax: 0.10.0
libtpu: 0.0.40
codegen_flags: <defaults>
</compile_context>

<pallas_src>
import functools

import jax
import jax.numpy as jnp
from jax.experimental import pallas as pl
from jax.experimental.pallas import tpu as pltpu

IN_F, HID, OUT_F = 10, 100, 10   # logical dims of the PyTorch module
FEAT_PAD = 16                    # feature dims zero-padded to a sublane multiple
LANE = 128                       # lane width; batch (now on lanes) tiles in multiples


def _round_up(n, m):
    return ((n + m - 1) // m) * m


def _affine_kernel(xT_ref, wT_ref, bT_ref, oT_ref):
    # xT: (FEAT_PAD, tb) batch-on-lanes, wT: (FEAT_PAD, FEAT_PAD) collapsed weight^T,
    # bT: (FEAT_PAD, 1).  One MXU matmul (f32 accumulation) + lane-broadcast bias add;
    # every load/store is lane-dense (tb is a multiple of 128 or the full batch).
    oT_ref[...] = (
        jnp.dot(wT_ref[...], xT_ref[...], preferred_element_type=jnp.float32)
        + bT_ref[...]
    ).astype(oT_ref.dtype)


@functools.partial(jax.jit, static_argnames=("block_b",))
def mlp_forward(x, w1, b1, w2, b2, w3, b3, *, block_b=2048):
    """x: (B, IN_F) f32.  w_i/b_i are logical (in,out)/(1,out) layer params.
    Returns (B, OUT_F) == fc3(fc2(fc1(x)))."""
    B = x.shape[0]

    # Collapse the three bias-affine layers (no activations) into one affine map.
    hp = functools.partial(jnp.dot, precision="highest")
    w_eff = hp(hp(w1, w2), w3)                    # (IN_F, OUT_F)
    b_eff = hp(hp(b1, w2) + b2, w3) + b3          # (1, OUT_F)

    # Transposed (batch-on-lanes) operands, feature dims zero-padded 10 -> 16.
    wT = jnp.pad(w_eff.T, ((0, FEAT_PAD - OUT_F), (0, FEAT_PAD - IN_F)))
    bT = jnp.pad(b_eff.T, ((0, FEAT_PAD - OUT_F), (0, 0)))

    # Lane-align the batch, pick a lane tile, and guarantee >= 2 grid steps whenever
    # the padded batch spans >= 2 lane tiles (so v7x's two TensorCores both get work).
    b_pad = _round_up(B, LANE)
    tb = min(block_b, b_pad)
    if tb == b_pad and b_pad >= 2 * LANE:
        tb = _round_up(b_pad // 2, LANE)
    b_pad = _round_up(b_pad, tb)

    xT = jnp.pad(x.T, ((0, FEAT_PAD - IN_F), (0, b_pad - B)))

    grid = (b_pad // tb,)
    stream_spec = pl.BlockSpec((FEAT_PAD, tb), lambda i: (0, i))      # streamed
    wT_spec = pl.BlockSpec((FEAT_PAD, FEAT_PAD), lambda i: (0, 0))    # resident
    bT_spec = pl.BlockSpec((FEAT_PAD, 1), lambda i: (0, 0))           # resident

    cost = pl.CostEstimate(
        flops=2 * B * IN_F * OUT_F,
        transcendentals=0,
        bytes_accessed=4 * (xT.size + wT.size + bT.size + FEAT_PAD * b_pad),
    )

    oT = pl.pallas_call(
        _affine_kernel,
        out_shape=jax.ShapeDtypeStruct((FEAT_PAD, b_pad), x.dtype),
        grid=grid,
        in_specs=[stream_spec, wT_spec, bT_spec],
        out_specs=stream_spec,
        compiler_params=pltpu.CompilerParams(
            dimension_semantics=("parallel",)),
        cost_estimate=cost,
    )(xT, wT, bT)

    return oT[:OUT_F, :B].T


def init_linear(key, in_f, out_f):
    # Deterministic init mimicking nn.Linear's uniform(-1/sqrt(in_f), 1/sqrt(in_f)),
    # stored pre-transposed as (in_f, out_f) so the forward is x @ w + b.
    k_w, k_b = jax.random.split(key)
    bound = 1.0 / jnp.sqrt(in_f)
    w = jax.random.uniform(k_w, (in_f, out_f), jnp.float32, -bound, bound)
    b = jax.random.uniform(k_b, (1, out_f), jnp.float32, -bound, bound)
    return w, b


def model_forward(x, params):
    (w1, b1), (w2, b2), (w3, b3) = params
    y_hat = mlp_forward(x, w1, b1, w2, b2, w3, b3)
    return {"y_hat": y_hat}


if __name__ == "__main__":
    key = jax.random.PRNGKey(0)
    k_x, k1, k2, k3 = jax.random.split(key, 4)

    B = 8
    x = jax.random.normal(k_x, (B, IN_F), jnp.float32)

    params = (
        init_linear(k1, IN_F, HID),
        init_linear(k2, HID, HID),
        init_linear(k3, HID, OUT_F),
    )

    out = model_forward(x, params)
    y_hat = jax.block_until_ready(out["y_hat"])

    # Reference: the original (uncollapsed) 3-layer forward in plain JAX at highest
    # matmul precision (the kernel path also runs f32/highest, so 1e-4 is comfortable).
    (w1, b1), (w2, b2), (w3, b3) = params
    h1 = jnp.dot(x, w1, precision="highest") + b1
    h2 = jnp.dot(h1, w2, precision="highest") + b2
    ref = jnp.dot(h2, w3, precision="highest") + b3

    assert y_hat.shape == (B, OUT_F)
    assert jnp.allclose(y_hat, ref, atol=1e-4, rtol=1e-3)

    print("KERNEL_OK")
</pallas_src>

<mosaic_0001>
module attributes {stable_mosaic.version = 11 : i64} {
  func.func @_affine_kernel(%arg0: i32, %arg1: memref<16x128xf32, #tpu.memory_space<vmem>>, %arg2: memref<16x16xf32, #tpu.memory_space<vmem>>, %arg3: memref<16x1xf32, #tpu.memory_space<vmem>>, %arg4: memref<16x128xf32, #tpu.memory_space<vmem>>) attributes {dimension_semantics = [#tpu.dimension_semantics<parallel>], iteration_bounds = array<i64: 1>, scalar_prefetch = 0 : i64, scratch_operands = 0 : i64, tpu.core_type = #tpu.core_type<tc>, window_params = [{transform_indices = @transform_0, window_bounds = array<i64: 16, 128>}, {pipeline_mode = #tpu.pipeline_mode<synchronous>, transform_indices = @transform_1, window_bounds = array<i64: 16, 16>}, {pipeline_mode = #tpu.pipeline_mode<synchronous>, transform_indices = @transform_2, window_bounds = array<i64: 16, 1>}, {transform_indices = @transform_3, window_bounds = array<i64: 16, 128>}]} {
    %c0 = arith.constant 0 : index
    %c0_0 = arith.constant 0 : index
    %0 = vector.load %arg2[%c0, %c0_0] : memref<16x16xf32, #tpu.memory_space<vmem>>, vector<16x16xf32>
    %c0_1 = arith.constant 0 : index
    %c0_2 = arith.constant 0 : index
    %1 = vector.load %arg1[%c0_1, %c0_2] : memref<16x128xf32, #tpu.memory_space<vmem>>, vector<16x128xf32>
    %cst = arith.constant dense<0.000000e+00> : vector<16x128xf32>
    %2 = tpu.matmul %0, %1, %cst {dimension_numbers = #tpu.dot_dimension_numbers<[1], [0], [0], [1], [0, 0, 1, 1], [], []>} : vector<16x16xf32>, vector<16x128xf32>, vector<16x128xf32> -> vector<16x128xf32>
    %c0_3 = arith.constant 0 : index
    %c0_4 = arith.constant 0 : index
    %3 = vector.load %arg3[%c0_3, %c0_4] : memref<16x1xf32, #tpu.memory_space<vmem>>, vector<16x1xf32>
    %4 = vector.broadcast %3 : vector<16x1xf32> to vector<16x128xf32>
    %5 = arith.addf %2, %4 : vector<16x128xf32>
    %c0_5 = arith.constant 0 : index
    %c0_6 = arith.constant 0 : index
    %6 = vector.load %arg4[%c0_5, %c0_6] : memref<16x128xf32, #tpu.memory_space<vmem>>, vector<16x128xf32>
    tpu.vector_store %arg4[%c0_5, %c0_6], %5 {strides = array<i32>} : memref<16x128xf32, #tpu.memory_space<vmem>>, vector<16x128xf32>,
    return
  }
  func.func @transform_0(%arg0: i32) -> (i32, i32) {
    %c0_i32 = arith.constant 0 : i32
    %c0_i32_0 = arith.constant 0 : i32
    return %c0_i32, %arg0 : i32, i32
  }
  func.func @transform_1(%arg0: i32) -> (i32, i32) {
    %c0_i32 = arith.constant 0 : i32
    %c0_i32_0 = arith.constant 0 : i32
    %c0_i32_1 = arith.constant 0 : i32
    return %c0_i32, %c0_i32_0 : i32, i32
  }
  func.func @transform_2(%arg0: i32) -> (i32, i32) {
    %c0_i32 = arith.constant 0 : i32
    %c0_i32_0 = arith.constant 0 : i32
    %c0_i32_1 = arith.constant 0 : i32
    return %c0_i32, %c0_i32_0 : i32, i32
  }
  func.func @transform_3(%arg0: i32) -> (i32, i32) {
    %c0_i32 = arith.constant 0 : i32
    %c0_i32_0 = arith.constant 0 : i32
    return %c0_i32, %arg0 : i32, i32
  }
}

</mosaic_0001>

<bundles_post_ra>
// kernel: mlp_forward.1
= control target key start
LH: loop header
LB: loop body
LE: loop exit
PB: predicated region body
PF: predicated region fallthrough
CT: control target
= control target key end

     0   :  { %v72_v0 = vmov 0   ;;  %vm30_vm0 = vcmask 130048   ;;  %s117_s2 = inlined_call_operand.vmem [shape: f32[16,1], index: 2, kind: input, shape index: {}]   ;;  %s118_s0 = inlined_call_operand.vmem [shape: f32[16,128], index: 0, kind: input, shape index: {}]   ;;  %s119_s1 = inlined_call_operand.vmem [shape: f32[16,16], index: 1, kind: input, shape index: {}]   ;;  %s120_s3 = inlined_call_operand.vmem [shape: f32[16,128], index: 3, kind: output, shape index: {}]  }
   0x1   :  { %71 = vset.pattern.permute.xlu0 %v72_v0  ;;  %v18_v1 = vld [vmem:[%s117_s2] sm:$0xff]  ;;  %v17_v2 = vld [vmem:[%s118_s0 + $0x8] sm:$0xff] }
   0x2   :  { %v16_v3 = vld [vmem:[%s118_s0] sm:$0xff]  ;;  %22 = vperm.xlu0 %71, %v18_v1   ;;  %51 = vmatpush.msra.mxu0 %v17_v2  ;;  %v15_v5 = vld [vmem:[%s119_s1 + $0x8] sm:$0xff] }
   0x3   :  { %v14_v4 = vld [vmem:[%s119_s1] sm:$0xff]  ;;  %68 = vmatpush.msra.mxu1 %v17_v2  ;;  %v19_v6 = vld [vmem:[%s117_s2 + $0x8] sm:$0xff] }
   0x4   :  { %52 = vmatpush.msra.mxu0 %v16_v3 }
   0x5   :  { %69 = vmatpush.msra.mxu1 %v16_v3  ;;  %66 = vmatmul.msk.f32.vlgmr.msra.gmra.mxu0 %vm30_vm0, %v14_v4 }
   0x6   :  { %67 = vmatmul.msk.f32.vlgmr.msra.gmra.mxu1 %vm30_vm0, %v15_v5 }
   0xa   :  { %27 = vperm.xlu0 %71, %v19_v6  }
  0x74   :  { %v23_v7 = vpop.permute.xlu0 %22 }
  0x7c   :  { %v28_v9 = vpop.permute.xlu0 %27 }
  0x82   :  { %v54_v8 = vpop.f32.mrf.mxu0 }
  0x83   :  { %v55_v10 = vadd.f32 %v54_v8, %v23_v7  ;;  %v57_v11 = vpop.f32.mrf.mxu1 }
  0x84   :  { %v58_v12 = vadd.f32 %v57_v11, %v28_v9 }
  0x85   :  { %60 = vst [vmem:[%s120_s3] sm:$0xff] %v55_v10 }
  0x86   :  { %61 = vst [vmem:[%s120_s3 + $0x8] sm:$0xff] %v58_v12 }

</bundles_post_ra>
